<compile_context>
chip_gen: v6e
topology: v6e:2x2x1
jax: 0.10.0
libtpu: 0.0.40
codegen_flags: <defaults>
</compile_context>

<pallas_src>
import jax
import jax.numpy as jnp
from jax.experimental import pallas as pl
from jax.experimental.pallas import tpu as pltpu

LN_EPS = 1e-12


def embeddings_kernel(ids_ref, item_ref, pos_ref, gamma_ref, beta_ref, out_ref):
    # ids_ref:   (1, S, 1) int32  — ids for the current batch row
    # item_ref:  (V, H) f32       — whole item-embedding table, VMEM resident
    # pos_ref:   (S, H) f32       — first S rows of the position table
    # gamma_ref: (1, H) f32, beta_ref: (1, H) f32
    # out_ref:   (S, H) f32       — rows b*S .. (b+1)*S-1 of the (B*S, H) output
    S, H = out_ref.shape
    V = item_ref.shape[0]

    # In-kernel gather of the item embeddings for all S positions at once:
    # one-hot(ids) @ table on the MXU (robust, fully vectorized; table row 0 is
    # zero, which preserves padding_idx=0 semantics).
    ids_col = ids_ref[0]                                             # (S, 1)
    vocab_iota = jax.lax.broadcasted_iota(jnp.int32, (S, V), 1)      # (S, V)
    onehot = (vocab_iota == ids_col).astype(jnp.float32)             # (S, V)
    items = jnp.dot(onehot, item_ref[...],
                    preferred_element_type=jnp.float32)              # (S, H)

    # Position embedding for position s is simply row s of the table.
    x = items + pos_ref[...]

    # TF-style LayerNorm over the hidden axis (epsilon inside the sqrt).
    u = jnp.mean(x, axis=-1, keepdims=True)
    xc = x - u
    s = jnp.mean(xc * xc, axis=-1, keepdims=True)
    y = xc * jax.lax.rsqrt(s + LN_EPS)
    y = gamma_ref[...] * y + beta_ref[...]                           # (1,H) bcast once per tile

    out_ref[...] = y.astype(out_ref.dtype)
    # TODO(synk): nn.Dropout is identity in eval mode / p=0.0; training-mode
    # dropout (pltpu.prng_seed + prng_random_bits per tile) is not implemented.


def embeddings_forward(input_ids, item_table, pos_table, gamma, beta):
    """input_ids: (B, S) int32 -> (B, S, H) float32."""
    B, S = input_ids.shape
    V, H = item_table.shape

    ids3 = input_ids.astype(jnp.int32).reshape(B, S, 1)
    gamma2 = gamma.reshape(1, H).astype(jnp.float32)
    beta2 = beta.reshape(1, H).astype(jnp.float32)

    grid_spec = pltpu.PrefetchScalarGridSpec(
        num_scalar_prefetch=0,
        grid=(B,),                                   # one whole sequence per step
        in_specs=[
            # ids for batch b, shaped (1, S, 1) so the lane dim equals the full
            # last dim and the sublane dim is S.
            pl.BlockSpec((1, S, 1), lambda b: (b, 0, 0)),
            # whole item table, VMEM resident (same block every step)
            pl.BlockSpec((V, H), lambda b: (0, 0)),
            # first S rows of the position table, VMEM resident
            pl.BlockSpec((S, H), lambda b: (0, 0)),
            # LayerNorm scale / shift, VMEM resident
            pl.BlockSpec((1, H), lambda b: (0, 0)),
            pl.BlockSpec((1, H), lambda b: (0, 0)),
        ],
        # (S, H) slab per batch element of a flat (B*S, H) output: 8 sublanes,
        # contiguous S*H*4-byte HBM writeback per step.
        out_specs=pl.BlockSpec((S, H), lambda b: (b, 0)),
    )

    out = pl.pallas_call(
        embeddings_kernel,
        grid_spec=grid_spec,
        out_shape=jax.ShapeDtypeStruct((B * S, H), jnp.float32),
        compiler_params=pltpu.CompilerParams(
            dimension_semantics=("parallel",)),      # shard batch across TCs on v7x
    )(ids3, item_table.astype(jnp.float32), pos_table.astype(jnp.float32),
      gamma2, beta2)

    return out.reshape(B, S, H)


def embeddings_reference(input_ids, item_table, pos_table, gamma, beta):
    B, S = input_ids.shape
    items = jnp.take(item_table, input_ids, axis=0)
    pos_ids = jnp.broadcast_to(jnp.arange(S), (B, S))
    pos = jnp.take(pos_table, pos_ids, axis=0)
    x = items + pos
    u = jnp.mean(x, axis=-1, keepdims=True)
    xc = x - u
    s = jnp.mean(xc * xc, axis=-1, keepdims=True)
    y = xc / jnp.sqrt(s + LN_EPS)
    return gamma * y + beta


if __name__ == "__main__":
    # args: item_size=11, max_seq_length=8, hidden_size=32, hidden_dropout_prob=0.0
    item_size, max_seq_length, hidden_size = 11, 8, 32
    B, S = 2, 8

    key = jax.random.PRNGKey(0)
    k_item, k_pos, k_ids = jax.random.split(key, 3)

    # Deterministic parameter init (shapes per the module's __init__).
    item_table = 0.02 * jax.random.normal(
        k_item, (item_size, hidden_size), dtype=jnp.float32)
    # padding_idx=0: row 0 of the item embedding is zero.
    item_table = item_table.at[0].set(0.0)
    pos_table = 0.02 * jax.random.normal(
        k_pos, (max_seq_length, hidden_size), dtype=jnp.float32)
    gamma = jnp.ones((hidden_size,), dtype=jnp.float32)   # LayerNorm.weight
    beta = jnp.zeros((hidden_size,), dtype=jnp.float32)   # LayerNorm.bias

    # Example input_ids, including padding (0) tokens.
    input_ids = jax.random.randint(k_ids, (B, S), 0, item_size, dtype=jnp.int32)

    out = embeddings_forward(input_ids, item_table, pos_table, gamma, beta)
    out = jax.block_until_ready(out)

    ref = embeddings_reference(input_ids, item_table, pos_table, gamma, beta)
    assert out.shape == (B, S, hidden_size)
    assert jnp.allclose(out, ref, atol=1e-5, rtol=1e-5), "mismatch vs reference"

    print("KERNEL_OK")
</pallas_src>

<mosaic_0001>
module attributes {stable_mosaic.version = 11 : i64} {
  func.func @embeddings_kernel(%arg0: i32, %arg1: memref<1x8x1xi32, #tpu.memory_space<vmem>>, %arg2: memref<11x32xf32, #tpu.memory_space<vmem>>, %arg3: memref<8x32xf32, #tpu.memory_space<vmem>>, %arg4: memref<1x32xf32, #tpu.memory_space<vmem>>, %arg5: memref<1x32xf32, #tpu.memory_space<vmem>>, %arg6: memref<8x32xf32, #tpu.memory_space<vmem>>) attributes {dimension_semantics = [#tpu.dimension_semantics<parallel>], iteration_bounds = array<i64: 2>, scalar_prefetch = 0 : i64, scratch_operands = 0 : i64, tpu.core_type = #tpu.core_type<tc>, window_params = [{transform_indices = @transform_0, window_bounds = array<i64: 1, 8, 1>}, {pipeline_mode = #tpu.pipeline_mode<synchronous>, transform_indices = @transform_1, window_bounds = array<i64: 11, 32>}, {pipeline_mode = #tpu.pipeline_mode<synchronous>, transform_indices = @transform_2, window_bounds = array<i64: 8, 32>}, {pipeline_mode = #tpu.pipeline_mode<synchronous>, transform_indices = @transform_3, window_bounds = array<i64: 1, 32>}, {pipeline_mode = #tpu.pipeline_mode<synchronous>, transform_indices = @transform_4, window_bounds = array<i64: 1, 32>}, {transform_indices = @transform_5, window_bounds = array<i64: 8, 32>}]} {
    %c0 = arith.constant 0 : index
    %c0_0 = arith.constant 0 : index
    %c0_1 = arith.constant 0 : index
    %0 = vector.load %arg1[%c0, %c0_0, %c0_1] : memref<1x8x1xi32, #tpu.memory_space<vmem>>, vector<1x8x1xi32>
    %1 = vector.shape_cast %0 : vector<1x8x1xi32> to vector<8x1xi32>
    %2 = tpu.iota {dimensions = array<i32: 1>} : vector<8x11xi32>
    %3 = vector.broadcast %1 : vector<8x1xi32> to vector<8x11xi32>
    %4 = arith.cmpi eq, %2, %3 : vector<8x11xi32>
    %5 = arith.extui %4 : vector<8x11xi1> to vector<8x11xi32>
    %6 = arith.sitofp %5 : vector<8x11xi32> to vector<8x11xf32>
    %c0_2 = arith.constant 0 : index
    %c0_3 = arith.constant 0 : index
    %7 = vector.load %arg2[%c0_2, %c0_3] : memref<11x32xf32, #tpu.memory_space<vmem>>, vector<11x32xf32>
    %cst = arith.constant dense<0.000000e+00> : vector<8x32xf32>
    %8 = tpu.matmul %6, %7, %cst {dimension_numbers = #tpu.dot_dimension_numbers<[1], [0], [0], [1], [0, 0, 1, 1], [], []>} : vector<8x11xf32>, vector<11x32xf32>, vector<8x32xf32> -> vector<8x32xf32>
    %c0_4 = arith.constant 0 : index
    %c0_5 = arith.constant 0 : index
    %9 = vector.load %arg3[%c0_4, %c0_5] : memref<8x32xf32, #tpu.memory_space<vmem>>, vector<8x32xf32>
    %10 = arith.addf %8, %9 : vector<8x32xf32>
    %cst_6 = arith.constant dense<0.000000e+00> : vector<8xf32>
    %11 = vector.multi_reduction <add>, %10, %cst_6 [1] : vector<8x32xf32> to vector<8xf32>
    %12 = vector.shape_cast %11 : vector<8xf32> to vector<8x1xf32>
    %cst_7 = arith.constant 3.200000e+01 : f32
    %13 = vector.broadcast %cst_7 : f32 to vector<8x1xf32>
    %14 = arith.divf %12, %13 : vector<8x1xf32>
    %15 = vector.broadcast %14 : vector<8x1xf32> to vector<8x32xf32>
    %16 = arith.subf %10, %15 : vector<8x32xf32>
    %17 = arith.mulf %16, %16 : vector<8x32xf32>
    %cst_8 = arith.constant dense<0.000000e+00> : vector<8xf32>
    %18 = vector.multi_reduction <add>, %17, %cst_8 [1] : vector<8x32xf32> to vector<8xf32>
    %19 = vector.shape_cast %18 : vector<8xf32> to vector<8x1xf32>
    %cst_9 = arith.constant 3.200000e+01 : f32
    %20 = vector.broadcast %cst_9 : f32 to vector<8x1xf32>
    %21 = arith.divf %19, %20 : vector<8x1xf32>
    %cst_10 = arith.constant 9.99999996E-13 : f32
    %22 = vector.broadcast %cst_10 : f32 to vector<8x1xf32>
    %23 = arith.addf %21, %22 : vector<8x1xf32>
    %24 = math.rsqrt %23 : vector<8x1xf32>
    %25 = vector.broadcast %24 : vector<8x1xf32> to vector<8x32xf32>
    %26 = arith.mulf %16, %25 : vector<8x32xf32>
    %c0_11 = arith.constant 0 : index
    %c0_12 = arith.constant 0 : index
    %27 = vector.load %arg4[%c0_11, %c0_12] : memref<1x32xf32, #tpu.memory_space<vmem>>, vector<1x32xf32>
    %28 = vector.broadcast %27 : vector<1x32xf32> to vector<8x32xf32>
    %29 = arith.mulf %28, %26 : vector<8x32xf32>
    %c0_13 = arith.constant 0 : index
    %c0_14 = arith.constant 0 : index
    %30 = vector.load %arg5[%c0_13, %c0_14] : memref<1x32xf32, #tpu.memory_space<vmem>>, vector<1x32xf32>
    %31 = vector.broadcast %30 : vector<1x32xf32> to vector<8x32xf32>
    %32 = arith.addf %29, %31 : vector<8x32xf32>
    %c0_15 = arith.constant 0 : index
    %c0_16 = arith.constant 0 : index
    %33 = vector.load %arg6[%c0_15, %c0_16] : memref<8x32xf32, #tpu.memory_space<vmem>>, vector<8x32xf32>
    tpu.vector_store %arg6[%c0_15, %c0_16], %32 {strides = array<i32>} : memref<8x32xf32, #tpu.memory_space<vmem>>, vector<8x32xf32>,
    return
  }
  func.func @transform_0(%arg0: i32) -> (i32, i32, i32) {
    %c0_i32 = arith.constant 0 : i32
    %c0_i32_0 = arith.constant 0 : i32
    %c0_i32_1 = arith.constant 0 : i32
    return %arg0, %c0_i32, %c0_i32_0 : i32, i32, i32
  }
  func.func @transform_1(%arg0: i32) -> (i32, i32) {
    %c0_i32 = arith.constant 0 : i32
    %c0_i32_0 = arith.constant 0 : i32
    %c0_i32_1 = arith.constant 0 : i32
    return %c0_i32, %c0_i32_0 : i32, i32
  }
  func.func @transform_2(%arg0: i32) -> (i32, i32) {
    %c0_i32 = arith.constant 0 : i32
    %c0_i32_0 = arith.constant 0 : i32
    %c0_i32_1 = arith.constant 0 : i32
    return %c0_i32, %c0_i32_0 : i32, i32
  }
  func.func @transform_3(%arg0: i32) -> (i32, i32) {
    %c0_i32 = arith.constant 0 : i32
    %c0_i32_0 = arith.constant 0 : i32
    %c0_i32_1 = arith.constant 0 : i32
    return %c0_i32, %c0_i32_0 : i32, i32
  }
  func.func @transform_4(%arg0: i32) -> (i32, i32) {
    %c0_i32 = arith.constant 0 : i32
    %c0_i32_0 = arith.constant 0 : i32
    %c0_i32_1 = arith.constant 0 : i32
    return %c0_i32, %c0_i32_0 : i32, i32
  }
  func.func @transform_5(%arg0: i32) -> (i32, i32) {
    %c0_i32 = arith.constant 0 : i32
    %c0_i32_0 = arith.constant 0 : i32
    return %arg0, %c0_i32 : i32, i32
  }
}

</mosaic_0001>

<bundles_post_ra>
// kernel: tpu_custom_call.1
= control target key start
LH: loop header
LB: loop body
LE: loop exit
PB: predicated region body
PF: predicated region fallthrough
CT: control target
= control target key end

     0   :  { %10 = vsyncpa [#allocation3], 0  ;;  %s770_s0 = inlined_call_operand.vmem [shape: s32[2,8,1], index: 0, kind: input, shape index: {}]   ;;  %s771_s1 = inlined_call_operand.vmem [shape: f32[11,32], index: 1, kind: input, shape index: {}]   ;;  %s772_s2 = inlined_call_operand.hbm [shape: f32[8,32], index: 2, kind: input, shape index: {}]   ;;  %s773_s3 = inlined_call_operand.vmem [shape: f32[1,32], index: 3, kind: input, shape index: {}]   ;;  %s774_s4 = inlined_call_operand.vmem [shape: f32[1,32], index: 4, kind: input, shape index: {}]   ;;  %s775_s5 = inlined_call_operand.hbm [shape: f32[16,32], index: 5, kind: output, shape index: {}]  }
   0x1   :  { %11 = vsyncpa [#allocation4], 0 }
   0x2   :  { %13 = vsyncpa [#allocation4 + $0x1], 0  ;;  %s650_s18 = smov 0   ;;  %s652_s19 = smov 0  }
   0x3   :  { %s654_s20 = smov 0   ;;  %s656_s21 = smov 0  }
   0x4 LB: > { %s671_s22 = sadd.s32 4294967295, %s613_s21   ;;  %s440_s23 = sadd.s32 4294967294, %s613_s21   ;;  %s613_s21 = sphi %s656_s21, %s783_s21   ;;  %s609_s20 = sphi %s654_s20, %s782_s20   ;;  %s605_s19 = sphi %s652_s19, %s781_s19   ;;  %s601_s18 = sphi %s650_s18, %s780_s18  }
   0x5   : > { %s675_s24 = sadd.s32 1, %s613_s21   ;;  %s136_s25 = sadd.s32 1, %s609_s20 }
   0x6   : > { %s133_s26 = ssub.s32 %s613_s21, %s675_s24  ;;  %p146_p0 = scmp.ne.s32.totalorder %s609_s20, %s605_s19 }
   0x7   : > { %p134_p1 = scmp.eq.s32.totalorder %s133_s26, 0  ;;  %p147_p2 = scmp.eq.s32.totalorder %s671_s22, 1 }
   0x8   : > { %p152_p3 = scmp.ne.s32.totalorder %s605_s19, %s601_s18  ;;  %p153_p4 = scmp.eq.s32.totalorder %s440_s23, 1 }
   0x9   : > { %s686_s27 = scalar_select %p134_p1, %s609_s20, %s136_s25  }
   0xa   : > { %p688_p5 = por %p147_p2, %p146_p0  ;;  %p692_p6 = por %p153_p4, %p152_p3 }
   0xb   : > { %p441_p7 = scmp.ge.s32.totalorder %s613_s21, 1  ;;  %p160_p8 = scmp.lt.s32.totalorder %s613_s21, 3 }
   0xc   : > { %s777_s29 = scalar_select %p692_p6, 1, 0 }
   0xd   : > { %p481_p9 = scmp.eq.s32.totalorder %s671_s22, 0  ;;  %p699_p10 = pnand %p441_p7, %p160_p8 }
   0xe   : > { %s615_s6 = smov [#allocation2]  }
   0xf   : > { %s176_s7 = sshll.u32 %s615_s6, 4  ;;  %p473_p11 = pneg %p699_p10  ;;  %s177_s7 = int_to_ptr.vmem [resolvable:$true] %s176_s7 }
  0x10   : > { %s534_s8 = scalar_lea.vmem %s177_s7, 128  ;;  %p542_p3 = scmp.lt.s32.totalorder %s177_s7, %s177_s7 }
  0x11   : > { %p474_p12 = pnand %p481_p9, %p473_p11  ;;  %p535_p0 = scmp.ne.s32.totalorder %s177_s7, %s534_s8 }
  0x12   : > { %p543_p4 = scmp.lt.s32.totalorder %s534_s8, %s534_s8 }
  0x13   : > { %p525_p13 = pneg %p474_p12 }
  0x14   : > { %p544_p6 = por %p543_p4, %p542_p3 }
  0x15   : > { %p537_p1 = pnand %p535_p0, %p525_p13 }
  0x17   : > { %p538_p2 = pneg %p537_p1 }
  0x19   : > { %p545_p7 = pnand %p544_p6, %p538_p2 }
  0x1b   : > { %548 = shalt.err (!%p545_p7)
}
  0x1c   : > { %476 = dma.hbm_to_vmem [thread:$0]  (!%p474_p12), %s772_s2, 128, %s177_s7, [#allocation3]  }
  0x1d   : > { %202 = sbr.rel (%p699_p10) target bundleno = 684 (0x2ac), region = 40 }
  0x22   : > { %592 = dma.done.wait (%p481_p9), [#allocation3], 128  }
  0x23   : > { %594 = vsyncadd (%p481_p9), [#allocation3], 4294967168  ;;  %p229_p8 = scmp.lt.s32.totalorder %s671_s22, 1  ;;  %v616_v0 = vmov 0   ;;  %v617_v1 = vmov 0.0   ;;  %vm249_vm0 = vcmask 1042432   ;;  %v234_v5 = vlaneseq }
  0x24   : > { %520 = vset.pattern.permute.xlu0 %v616_v0  ;;  %460 = vmatprep.subr.mxu0 %v617_v1  ;;  %vm618_vm1 = vmmov 0   ;;  %v243_v3 = vld [vmem:[%s771_s1 + $0x8] sm:$0x7]  ;;  %v242_v4 = vld [vmem:[%s771_s1] sm:$0xff]  ;;  %vm245_vm2 = vcmask 89088   ;;  %vm323_vm4 = vcmask 261120  }
  0x25   : > { %s230_s11 = scalar_select %p229_p8, %s671_s22, 1  ;;  %464 = vmatprep.mubr.msk.f32.mxu0 %vm618_vm1, %v617_v1  ;;  %461 = vmatpush3.msk.msra.mxu0 %vm249_vm0, %v243_v3  ;;  %v235_v6 = vand.u32 127, %v234_v5  ;;  %v244_v9 = vld [vmem:[#allocation2] sm:$0xff] }
  0x26   : > { %462 = vmatprep.subr.mxu0 %v617_v1  ;;  %s226_s26 = sand.u32 1, %s605_s19   ;;  %v451_v23 = vld [vmem:[%s773_s3] ss:$0 sm:$0xff]  ;;  %s454_s10 = sshll.u32 %s671_s22, 7 }
  0x27   : > { %s447_s12 = sshll.u32 %s230_s11, 3  ;;  %463 = vmatpush3.msra.mxu0 %v242_v4  ;;  %s446_s30 = sshll.u32 %s226_s26, 3  ;;  %v452_v25 = vld [vmem:[%s774_s4] ss:$0 sm:$0xff] }
  0x28   : > { %s232_s15 = scalar_lea.vmem %s770_s0, %s447_s12  ;;  %s228_s11 = scalar_lea.vmem [#allocation5], %s446_s30 }
  0x29   : > { %v233_v2 = vld [vmem:[%s232_s15] sm:$0xff]  ;;  %s369_s12 = sshll.u32 %s228_s11, 4  ;;  %s367_s15 = scalar_lea.hbm %s775_s5, %s454_s10  ;;  %s370_s12 = int_to_ptr.vmem [resolvable:$true] %s369_s12 }
  0x2a   : > { %237 = vperm.xlu0 %520, %v233_v2   ;;  %s356_s16 = scalar_lea.sflag [#allocation4], %s226_s26  ;;  %s549_s17 = scalar_lea.vmem %s370_s12, 128 }
  0x2b   : > { %p550_p6 = scmp.ne.s32.totalorder %s370_s12, %s549_s17  ;;  %s619_s23 = smov [#allocation5]  }
  0x2c   : > { %s553_s25 = sshll.u32 %s619_s23, 4  ;;  %s554_s25 = int_to_ptr.vmem [resolvable:$false] %s553_s25 }
  0x2d   : > { %p551_p9 = pnand %p550_p6, %p688_p5  ;;  %s555_s22 = scalar_lea.vmem %s554_s25, 256 }
  0x2e   : > { %p556_p11 = scmp.lt.s32.totalorder %s370_s12, %s554_s25  ;;  %p557_p12 = scmp.lt.s32.totalorder %s555_s22, %s549_s17 }
  0x2f   : > { %p552_p10 = pneg %p551_p9 }
  0x30   : > { %p558_p13 = por %p557_p12, %p556_p11 }
  0x32   : > { %p559_p0 = pnand %p558_p13, %p552_p10 }
  0xa5   : > { %v238_v7 = vpop.permute.xlu0 %237 }
  0xa6   : > { %vm239_vm3 = vcmp.eq.s32.totalorder %v235_v6, %v238_v7 }
  0xa7   : > { %v448_v8 = vsel %vm239_vm3, 1.0, %v617_v1 }
  0xa8   : > { %465 = vmatmul.mubr.msk.f32.vlgmr.msra.gmra.mxu0 %vm245_vm2, %v448_v8 }
 0x168   : > { %v319_v10 = vpop.f32.mrf.mxu0 }
 0x169   : > { %v320_v11 = vadd.f32 %v319_v10, %v244_v9 }
 0x16a   : > { %v466_v12 = vpop.f32.mrf.mxu0 }
 0x16b   : > { %v324_v13 = vsel %vm323_vm4, %v320_v11, 0.0 }
 0x16c   : > { %325 = vadd.xlane.f32.xlu0 %v324_v13 }
 0x1f5   : > { %v326_v14 = vpop.xlane.xlu0 %325 }
 0x1f6   : > { %v328_v15 = vmul.f32 0.03125, %v326_v14 }
 0x1f8   : > { %v329_v16 = vsub.f32 %v320_v11, %v328_v15 }
 0x1fa   : > { %v330_v17 = vmul.f32 %v329_v16, %v329_v16 }
 0x1fc   : > { %v331_v18 = vsel %vm323_vm4, %v330_v17, 0.0 }
 0x1fd   : > { %332 = vadd.xlane.f32.xlu1 %v331_v18 }
 0x286   : > { %v333_v19 = vpop.xlane.xlu1 %332 }
 0x287   : > { %v334_v20 = vmul.f32 0.03125, %v333_v19 }
 0x289   : > { %v335_v21 = vadd.f32 1e-12, %v334_v20 }
 0x28b   : > { %521 = vrsqrt.f32 %v335_v21 }
 0x298   : > { %v522_v22 = vpop.eup %521 }
 0x299   : > { %v337_v24 = vmul.f32 %v522_v22, %v329_v16 }
 0x29b   : > { %v345_v26 = vmul.f32 %v451_v23, %v337_v24 }
 0x29d   : > { %v353_v27 = vadd.f32 %v452_v25, %v345_v26 }
 0x29f   : > { %354 = vst.msk [vmem:[%s228_s11] sm:$0xff] %vm323_vm4, %v353_v27 }
 0x2a0   : > { %562 = shalt.err (!%p559_p0)
}
 0x2a1   : > { %s563_s30 = scalar_lea.hbm %s367_s15, 128  ;;  %s567_s7 = scalar_lea.hbm %s775_s5, 256 }
 0x2a2   : > { %p564_p1 = scmp.ne.s32.totalorder %s367_s15, %s563_s30  ;;  %p568_p4 = scmp.lt.s32.totalorder %s367_s15, %s775_s5 }
 0x2a3   : > { %p569_p7 = scmp.lt.s32.totalorder %s567_s7, %s563_s30 }
 0x2a4   : > { %p565_p2 = pnand %p564_p1, %p688_p5 }
 0x2a5   : > { %p570_p8 = por %p569_p7, %p568_p4 }
 0x2a6   : > { %p566_p3 = pneg %p565_p2 }
 0x2a8   : > { %p571_p6 = pnand %p570_p8, %p566_p3 }
 0x2aa   : > { %574 = shalt.err (!%p571_p6)
}
 0x2ab   : > { %471 = dma.vmem_to_hbm [thread:$0]  (%p688_p5), %s370_s12, 128, %s367_s15, %s356_s16  }
 0x2ac PF: > { %p483_p9 = scmp.ge.s32.totalorder %s613_s21, 2  ;;  %s381_s10 = sand.u32 1, %s601_s18  }
 0x2ad   : > { %p779_p10 = scmp.ne.s32.totalorder %s777_s29, 0  ;;  %s382_s11 = scalar_lea.sflag [#allocation4], %s381_s10 }
 0x2af   : > { %p478_p11 = pnand %p483_p9, %p779_p10 }
 0x2b1   : > { %p479_p12 = pneg %p478_p11 }
 0x2b3   : > { %596 = dma.done.wait (%p479_p12), %s382_s11, 128  }
 0x2b4   : > { %598 = vsyncadd (%p479_p12), %s382_s11, 4294967168  ;;  %p16_p13 = scmp.ge.s32.totalorder %s675_s24, 4   ;;  %s780_s18 = smov %s605_s19 }
 0x2b5   : > { %s781_s19 = smov %s609_s20  ;;  %s782_s20 = smov %s686_s27 }
 0x2b6   : > { %s783_s21 = smov %s675_s24  ;;  %18 = sbr.rel (!%p16_p13) target bundleno = 4 (0x4), region = 80 }
 0x2bb   :  { %387 = vsyncpa [#allocation3], 1 }
 0x2bc   :  { %389 = vsyncpa [#allocation3 + $0x1], 1 }
 0x2bd   :  { %390 = vsyncpa [#allocation4], 1 }
 0x2be   :  { %392 = vsyncpa [#allocation4 + $0x1], 1 }

</bundles_post_ra>
